<compile_context>
chip_gen: v7x
topology: tpu7x:2x2x1
jax: 0.10.0
libtpu: 0.0.40
codegen_flags: <defaults>
</compile_context>

<pallas_src>
import jax
import jax.numpy as jnp
from jax.experimental import pallas as pl
from jax.experimental.pallas import tpu as pltpu


def _add_kernel(x1_ref, x2_ref, o_ref):
    # Streaming elementwise add on the VPU; dtype promotion happens here so the
    # wrapper never spends an extra HBM pass on .astype().
    o_ref[...] = x1_ref[...].astype(o_ref.dtype) + x2_ref[...].astype(o_ref.dtype)


_LANE_CHOICES = (2048, 1024, 512, 256, 128)
_SMALL_BYTES = 1 << 20  # below this the pallas_call fixed cost dominates


def _chip_block_config():
    """Generation-aware (target_block_bytes, vmem_limit_bytes | None)."""
    kind = ""
    try:
        kind = jax.devices()[0].device_kind.lower()
    except Exception:
        pass
    if "7x" in kind or "v7" in kind:
        # 3 arrays x 2 bufs x 8 MiB = 48 MiB; raise the scoped-VMEM limit
        # (64 MiB physical on v7x) to cut per-step overhead at 3.2 TB/s.
        return 8 << 20, 50 << 20
    if "v6" in kind:
        # 3 x 2 x 4 MiB = 24 MiB, inside the 32 MiB scoped default.
        return 4 << 20, None
    # v5e (16 MiB scoped default), v5p, v4, unknown: 12 MiB footprint is safe.
    return 2 << 20, None


def addition_fuser(x1, x2, *, force_pallas=False):
    """Pallas TPU equivalent of AdditionFuser.forward: x1 + x2 (same shape)."""
    assert x1.shape == x2.shape, (
        f"Shapes of x1 {x1.shape} and x2 {x2.shape} do not match"
    )
    orig_shape = x1.shape
    out_dtype = jnp.result_type(x1.dtype, x2.dtype)
    out_itemsize = jnp.dtype(out_dtype).itemsize
    in_itemsizes = (jnp.dtype(x1.dtype).itemsize, jnp.dtype(x2.dtype).itemsize)
    # Sublane packing from the narrowest dtype (8 rows f32, 16 bf16/f16, 32 int8)
    # so every input's DMA stays full-tile even for mixed-dtype adds.
    packing = 8 * max(1, 4 // min(min(in_itemsizes), out_itemsize))

    n = x1.size
    if n == 0:
        return jnp.zeros(orig_shape, out_dtype)
    if not force_pallas and n * out_itemsize < _SMALL_BYTES:
        # Tiny tensors: let XLA fuse the add; avoids kernel launch + pipeline prologue.
        return jnp.add(x1, x2)

    target_block_bytes, vmem_limit = _chip_block_config()
    compiler_kwargs = dict(dimension_semantics=("parallel",))
    if vmem_limit is not None:
        compiler_kwargs["vmem_limit_bytes"] = vmem_limit

    cost = pl.CostEstimate(
        flops=n,
        transcendentals=0,
        bytes_accessed=n * (in_itemsizes[0] + in_itemsizes[1] + out_itemsize),
    )

    if n % 128 == 0:
        # --- Lane-dense 2-D streaming path (contiguous reshape, no padding). ---
        lanes = next((c for c in _LANE_CHOICES if n % c == 0 and n // c >= 8), None)
        if lanes is None:
            lanes = next(c for c in _LANE_CHOICES if n % c == 0)
        rows = n // lanes
        target_rows = max(packing, target_block_bytes // (lanes * out_itemsize))
        target_rows = (target_rows // packing) * packing
        block_rows = rows if rows <= target_rows else target_rows
        grid = (pl.cdiv(rows, block_rows),)
        spec = pl.BlockSpec((block_rows, lanes), lambda i: (i, 0))
        out_flat_shape = (rows, lanes)
        args = (x1.reshape(rows, lanes), x2.reshape(rows, lanes))
    else:
        # --- Unaligned element count: flat 1-D pipeline, partial last block is
        #     masked by Pallas. No pad / slice passes (no extra HBM traffic). ---
        vreg_elems = packing * 128
        block_elems = max(
            vreg_elems,
            (target_block_bytes // out_itemsize) // vreg_elems * vreg_elems,
        )
        if block_elems > n:
            block_elems = -(-n // vreg_elems) * vreg_elems  # single masked block
        grid = (pl.cdiv(n, block_elems),)
        spec = pl.BlockSpec((block_elems,), lambda i: (i,))
        out_flat_shape = (n,)
        args = (x1.reshape(n), x2.reshape(n))

    out = pl.pallas_call(
        _add_kernel,
        out_shape=jax.ShapeDtypeStruct(out_flat_shape, out_dtype),
        grid_spec=pltpu.PrefetchScalarGridSpec(
            num_scalar_prefetch=0,
            grid=grid,
            in_specs=[spec, spec],
            out_specs=spec,
        ),
        compiler_params=pltpu.CompilerParams(**compiler_kwargs),
        cost_estimate=cost,
    )(*args)

    return out.reshape(orig_shape)


if __name__ == "__main__":
    # AdditionFuser has no parameters (empty __init__), only the two inputs.
    key = jax.random.PRNGKey(0)
    k1, k2, k3, k4 = jax.random.split(key, 4)

    # 1) Small NCHW-style shape, forced through the Pallas 2-D lane-dense path.
    shape = (2, 4, 16, 16)
    x1 = jax.random.normal(k1, shape, dtype=jnp.float32)
    x2 = jax.random.normal(k2, shape, dtype=jnp.float32)
    out = jax.block_until_ready(addition_fuser(x1, x2, force_pallas=True))
    ref = x1 + x2
    assert out.shape == ref.shape and out.dtype == ref.dtype
    assert jnp.allclose(out, ref, atol=1e-6, rtol=1e-6)

    # 2) Unaligned element count (not a multiple of 128): exercises the 1-D
    #    masked path that replaced the old pad+slice fallback.
    y1 = jax.random.normal(k3, (3, 127), dtype=jnp.float32)
    y2 = jax.random.normal(k4, (3, 127), dtype=jnp.float32)
    out_u = jax.block_until_ready(addition_fuser(y1, y2, force_pallas=True))
    assert jnp.allclose(out_u, y1 + y2, atol=1e-6, rtol=1e-6)

    # 3) Mixed dtype (bf16 + f32): in-kernel promotion, widest sublane packing.
    z1 = x1.astype(jnp.bfloat16)
    out_m = jax.block_until_ready(addition_fuser(z1, x2, force_pallas=True))
    ref_m = z1.astype(jnp.float32) + x2
    assert out_m.dtype == ref_m.dtype
    assert jnp.allclose(out_m, ref_m, atol=1e-6, rtol=1e-6)

    # 4) Default small-input fast path (plain XLA add).
    out_s = jax.block_until_ready(addition_fuser(x1, x2))
    assert jnp.allclose(out_s, ref, atol=1e-6, rtol=1e-6)

    print("KERNEL_OK")
</pallas_src>

<mosaic_0001>
module attributes {stable_mosaic.version = 11 : i64} {
  func.func @_add_kernel(%arg0: i32, %arg1: memref<8x256xf32, #tpu.memory_space<vmem>>, %arg2: memref<8x256xf32, #tpu.memory_space<vmem>>, %arg3: memref<8x256xf32, #tpu.memory_space<vmem>>) attributes {dimension_semantics = [#tpu.dimension_semantics<parallel>], iteration_bounds = array<i64: 1>, scalar_prefetch = 0 : i64, scratch_operands = 0 : i64, tpu.core_type = #tpu.core_type<tc>, window_params = [{transform_indices = @transform_0, window_bounds = array<i64: 8, 256>}, {transform_indices = @transform_1, window_bounds = array<i64: 8, 256>}, {transform_indices = @transform_2, window_bounds = array<i64: 8, 256>}]} {
    %c0 = arith.constant 0 : index
    %c0_0 = arith.constant 0 : index
    %0 = vector.load %arg1[%c0, %c0_0] : memref<8x256xf32, #tpu.memory_space<vmem>>, vector<8x256xf32>
    %c0_1 = arith.constant 0 : index
    %c0_2 = arith.constant 0 : index
    %1 = vector.load %arg2[%c0_1, %c0_2] : memref<8x256xf32, #tpu.memory_space<vmem>>, vector<8x256xf32>
    %2 = arith.addf %0, %1 : vector<8x256xf32>
    %c0_3 = arith.constant 0 : index
    %c0_4 = arith.constant 0 : index
    %3 = vector.load %arg3[%c0_3, %c0_4] : memref<8x256xf32, #tpu.memory_space<vmem>>, vector<8x256xf32>
    tpu.vector_store %arg3[%c0_3, %c0_4], %2 {strides = array<i32>} : memref<8x256xf32, #tpu.memory_space<vmem>>, vector<8x256xf32>,
    return
  }
  func.func @transform_0(%arg0: i32) -> (i32, i32) {
    %c0_i32 = arith.constant 0 : i32
    %c0_i32_0 = arith.constant 0 : i32
    return %arg0, %c0_i32 : i32, i32
  }
  func.func @transform_1(%arg0: i32) -> (i32, i32) {
    %c0_i32 = arith.constant 0 : i32
    %c0_i32_0 = arith.constant 0 : i32
    return %arg0, %c0_i32 : i32, i32
  }
  func.func @transform_2(%arg0: i32) -> (i32, i32) {
    %c0_i32 = arith.constant 0 : i32
    %c0_i32_0 = arith.constant 0 : i32
    return %arg0, %c0_i32 : i32, i32
  }
}

</mosaic_0001>

<bundles_post_ra>
// kernel: tpu_custom_call.1
= control target key start
LH: loop header
LB: loop body
LE: loop exit
PB: predicated region body
PF: predicated region fallthrough
CT: control target
= control target key end

     0   :  { %7 = vsyncpa [#allocation3], 0  ;;  %s189_s0 = inlined_call_operand.hbm [shape: f32[8,256], index: 0, kind: input, shape index: {}]   ;;  %s190_s1 = inlined_call_operand.hbm [shape: f32[8,256], index: 1, kind: input, shape index: {}]   ;;  %s191_s2 = inlined_call_operand.hbm [shape: f32[8,256], index: 2, kind: output, shape index: {}]  }
   0x1   :  { %8 = vsyncpa [#allocation6], 0 }
   0x2   :  { %9 = vsyncpa [#allocation4], 0  ;;  %s135_s9 = smov [#allocation2]   ;;  %s136_s11 = smov [#allocation5]  }
   0x3   :  { %s16_s10 = sshll.u32 %s135_s9, 4  ;;  %s26_s12 = sshll.u32 %s136_s11, 4  ;;  %s17_s10 = int_to_ptr.vmem [resolvable:$true] %s16_s10  ;;  %s27_s12 = int_to_ptr.vmem [resolvable:$true] %s26_s12 }
   0x4   :  { %s63_s15 = scalar_lea.hbm %s189_s0, 256 }
   0x5   :  { %p64_p0 = scmp.ne.s32.totalorder %s189_s0, %s63_s15  ;;  %p67_p1 = scmp.lt.u32.totalorder %s63_s15, %s189_s0 }
   0x7   :  { %p69_p2 = pnand %p67_p1, %p64_p0 }
   0x9   :  { %72 = shalt.err (!%p69_p2)
}
   0xa   :  { %s73_s20 = scalar_lea.vmem %s17_s10, 256  ;;  %p78_p4 = scmp.lt.s32.totalorder %s17_s10, %s17_s10 }
   0xb   :  { %p74_p3 = scmp.ne.s32.totalorder %s17_s10, %s73_s20  ;;  %p79_p5 = scmp.lt.s32.totalorder %s73_s20, %s73_s20 }
   0xd   :  { %p80_p6 = por %p79_p5, %p78_p4 }
   0xf   :  { %p81_p7 = pnand %p80_p6, %p74_p3 }
  0x11   :  { %84 = shalt.err (!%p81_p7)
}
  0x12   :  { %19 = dma.hbm_to_vmem [thread:$0]  %s189_s0, 256, %s17_s10, [#allocation3]  }
  0x13   :  { %s85_s25 = scalar_lea.hbm %s190_s1, 256 }
  0x14   :  { %p86_p8 = scmp.ne.s32.totalorder %s190_s1, %s85_s25  ;;  %p89_p9 = scmp.lt.u32.totalorder %s85_s25, %s190_s1 }
  0x16   :  { %p91_p10 = pnand %p89_p9, %p86_p8 }
  0x18   :  { %94 = shalt.err (!%p91_p10)
}
  0x19   :  { %s95_s30 = scalar_lea.vmem %s27_s12, 256  ;;  %p100_p12 = scmp.lt.s32.totalorder %s27_s12, %s27_s12 }
  0x1a   :  { %p96_p11 = scmp.ne.s32.totalorder %s27_s12, %s95_s30  ;;  %p101_p13 = scmp.lt.s32.totalorder %s95_s30, %s95_s30 }
  0x1c   :  { %p102_p0 = por %p101_p13, %p100_p12 }
  0x1e   :  { %p103_p1 = pnand %p102_p0, %p96_p11 }
  0x20   :  { %106 = shalt.err (!%p103_p1)
}
  0x21   :  { %29 = dma.hbm_to_vmem [thread:$0]  %s190_s1, 256, %s27_s12, [#allocation6]  }
  0x22   :  { %129 = dma.done.wait [#allocation3], 256  }
  0x23   :  { %130 = vsyncadd [#allocation3], 4294967040 }
  0x24   :  { %131 = dma.done.wait [#allocation6], 256  }
  0x25   :  { %132 = vsyncadd [#allocation6], 4294967040  ;;  %s137_s4 = smov [#allocation7]   ;;  %v36_v0 = vld [vmem:[#allocation2] sm:$0xff]  ;;  %v38_v1 = vld [vmem:[#allocation5] sm:$0xff] }
  0x26   :  { %s50_s5 = sshll.u32 %s137_s4, 4  ;;  %v37_v2 = vld [vmem:[#allocation2 + $0x8] sm:$0xff]  ;;  %v40_v3 = vadd.f32 %v38_v1, %v36_v0  ;;  %v39_v4 = vld [vmem:[#allocation5 + $0x8] sm:$0xff]  ;;  %s51_s5 = int_to_ptr.vmem [resolvable:$true] %s50_s5 }
  0x27   :  { %v41_v5 = vadd.f32 %v39_v4, %v37_v2  ;;  %s107_s6 = scalar_lea.vmem %s51_s5, 256  ;;  %p112_p3 = scmp.lt.s32.totalorder %s51_s5, %s51_s5 }
  0x28   :  { %42 = vst [vmem:[#allocation7] sm:$0xff] %v40_v3  ;;  %p108_p2 = scmp.ne.s32.totalorder %s51_s5, %s107_s6  ;;  %p113_p4 = scmp.lt.s32.totalorder %s107_s6, %s107_s6 }
  0x29   :  { %43 = vst [vmem:[#allocation7 + $0x8] sm:$0xff] %v41_v5 }
  0x2a   :  { %p114_p5 = por %p113_p4, %p112_p3 }
  0x2c   :  { %p115_p6 = pnand %p114_p5, %p108_p2 }
  0x2e   :  { %118 = shalt.err (!%p115_p6)
}
  0x2f   :  { %s119_s8 = scalar_lea.hbm %s191_s2, 256 }
  0x30   :  { %p120_p7 = scmp.ne.s32.totalorder %s191_s2, %s119_s8  ;;  %p123_p8 = scmp.lt.u32.totalorder %s119_s8, %s191_s2 }
  0x32   :  { %p125_p9 = pnand %p123_p8, %p120_p7 }
  0x34   :  { %128 = shalt.err (!%p125_p9)
}
  0x35   :  { %53 = dma.vmem_to_hbm [thread:$0]  %s51_s5, 256, %s191_s2, [#allocation4]  }
  0x36   :  { %133 = dma.done.wait [#allocation4], 256  }
  0x37   :  { %134 = vsyncadd [#allocation4], 4294967040 }
  0x38   :  { %57 = vsyncpa [#allocation3], 1 }
  0x39   :  { %58 = vsyncpa [#allocation6], 1 }
  0x3a   :  { %59 = vsyncpa [#allocation4], 1 }

</bundles_post_ra>
